<compile_context>
chip_gen: v6e
topology: v6e:2x2x1
jax: 0.10.0
libtpu: 0.0.40
codegen_flags: <defaults>
</compile_context>

<pallas_src>
import jax
import jax.numpy as jnp
from jax.experimental import pallas as pl
from jax.experimental.pallas import tpu as pltpu


def _round_up(x, m):
    return ((x + m - 1) // m) * m


def charcnn_kernel(comb_ref, ew_ref, b_ref, out_ref):
    """Fused char-embedding gather + Conv1d(k=3, pad=1) + global max pool.

    comb_ref: (L, TN, K) int32.  comb[l, n, k] = k*Vp + id of the char at padded
              position l+k of word n, or -1 for conv zero-padding / padded-out
              tail words (all-zero one-hot row).
    ew_ref:   (J, Hp) bf16 pre-contracted table, EW[k*Vp + v] = char_emb[v] @ W[k];
              rows >= K*Vp and cols >= H are zero padding.
    b_ref:    (1, Hp) f32 conv bias (zero padded).
    out_ref:  (TN, Hp) f32 max-pooled char features (bias added after the max).
    """
    comb = comb_ref[...]                                  # (L, TN, K)
    l_dim, tn, k_taps = comb.shape
    j_dim, h_pad = ew_ref.shape

    # virtual one-hot over the combined (tap, vocab) axis: hit[l, n, j] = 1 iff
    # any tap's combined id equals j.  Sentinel -1 never matches.
    j_iota = jax.lax.broadcasted_iota(jnp.int32, (l_dim, tn, j_dim), 2)
    hit = comb[:, :, 0:1] == j_iota
    for k in range(1, k_taps):
        hit = jnp.logical_or(hit, comb[:, :, k:k + 1] == j_iota)

    # embedding gather + all conv taps fused into ONE MXU matmul
    # (lane-aligned depth J, bf16 operands, f32 accumulation).
    lhs = hit.astype(jnp.bfloat16).reshape(l_dim * tn, j_dim)
    conv = jnp.dot(lhs, ew_ref[...],
                   preferred_element_type=jnp.float32)    # (L*TN, Hp)

    # max-pool over word length: reduce the leading (contiguous slab) axis.
    pooled = jnp.max(conv.reshape(l_dim, tn, h_pad), axis=0)   # (TN, Hp)

    # bias is constant over the pooled axis -> add once after the max (exact).
    out_ref[...] = (pooled + b_ref[...]).astype(out_ref.dtype)


def char_cnn_features(char_ids, char_emb, conv_w, conv_b, *, tile_n=256):
    """char_ids (N, L) int32 -> (N, H) f32: embed -> conv1d(k=3, pad=1) -> max pool."""
    n_words, word_len = char_ids.shape
    vocab, cdim = char_emb.shape
    num_taps, cdim2, hidden = conv_w.shape
    assert cdim == cdim2

    vocab_p = _round_up(vocab, 8)
    j_raw = num_taps * vocab_p
    j_dim = _round_up(j_raw, 128)        # lane-aligned contraction depth
    h_pad = _round_up(hidden, 128)       # lane-dense output (unmasked stores)

    # Pre-contract embedding table with each conv tap: EW[k, v] = E[v] @ W[k].
    ew = jnp.einsum("vc,kch->kvh", char_emb, conv_w)              # (K, V, H) f32
    ew = jnp.pad(ew, ((0, 0), (0, vocab_p - vocab), (0, 0)))
    ew_flat = ew.reshape(j_raw, hidden)
    ew_flat = jnp.pad(ew_flat, ((0, j_dim - j_raw), (0, h_pad - hidden)))
    ew_flat = ew_flat.astype(jnp.bfloat16)                        # (J, Hp)

    bias = jnp.pad(conv_b.astype(jnp.float32),
                   (0, h_pad - hidden)).reshape(1, h_pad)         # (1, Hp)

    # Conv zero-padding encoded as sentinel id -1 (all-zero one-hot row).
    ids_pad = jnp.pad(char_ids.astype(jnp.int32), ((0, 0), (1, 1)),
                      constant_values=-1)                         # (N, L+2)
    win = jnp.stack([ids_pad[:, k:k + word_len] for k in range(num_taps)],
                    axis=-1)                                      # (N, L, K)
    offs = jnp.arange(num_taps, dtype=jnp.int32) * vocab_p
    comb = jnp.where(win >= 0, win + offs, -1)                    # (N, L, K)
    comb = jnp.transpose(comb, (1, 0, 2))                         # (L, N, K)

    # Tile sizing: rows are a multiple of 8; keep at least 2 grid blocks whenever
    # possible so both v7x TensorCores get work (grid axis is "parallel").
    half = _round_up(max(1, -(-n_words // 2)), 8)
    tile_n = max(8, min(_round_up(tile_n, 8), half))
    n_pad = _round_up(n_words, tile_n)
    comb = jnp.pad(comb, ((0, 0), (0, n_pad - n_words), (0, 0)),
                   constant_values=-1)                            # (L, n_pad, K)

    cost = pl.CostEstimate(
        flops=2 * n_pad * word_len * j_dim * h_pad,
        transcendentals=0,
        bytes_accessed=(comb.size * 4 + ew_flat.size * 2 + bias.size * 4
                        + n_pad * h_pad * 4),
    )

    out = pl.pallas_call(
        charcnn_kernel,
        out_shape=jax.ShapeDtypeStruct((n_pad, h_pad), jnp.float32),
        grid_spec=pltpu.PrefetchScalarGridSpec(
            num_scalar_prefetch=0,
            grid=(n_pad // tile_n,),
            in_specs=[
                pl.BlockSpec((word_len, tile_n, num_taps), lambda i: (0, i, 0)),
                pl.BlockSpec((j_dim, h_pad), lambda i: (0, 0)),
                pl.BlockSpec((1, h_pad), lambda i: (0, 0)),
            ],
            out_specs=pl.BlockSpec((tile_n, h_pad), lambda i: (i, 0)),
        ),
        compiler_params=pltpu.CompilerParams(
            dimension_semantics=("parallel",),
            vmem_limit_bytes=32 * 1024 * 1024),
        cost_estimate=cost,
    )(comb, ew_flat, bias)
    return out[:n_words, :hidden]


def _char_cnn_reference(char_ids, char_emb, conv_w, conv_b):
    """Plain-JAX f32 reference of the char path (for a sanity check)."""
    e = jnp.take(char_emb, char_ids, axis=0)                      # (N, L, C)
    ep = jnp.pad(e, ((0, 0), (1, 1), (0, 0)))                     # conv padding=1
    L = char_ids.shape[1]
    conv = sum(jnp.einsum("nlc,ch->nlh", ep[:, k:k + L, :], conv_w[k])
               for k in range(conv_w.shape[0])) + conv_b
    return jnp.max(conv, axis=1)


def uniform_embedding(key, vocab, dim):
    # mirrors WordRep.random_embedding: uniform(-sqrt(3/dim), sqrt(3/dim))
    scale = jnp.sqrt(3.0 / dim)
    return jax.random.uniform(key, (vocab, dim), jnp.float32, -scale, scale)


def init_params(key, *, word_vocab, word_dim, char_vocab, char_emb_dim,
                char_hidden_dim, feat_vocabs, feat_dims):
    keys = jax.random.split(key, 4 + len(feat_vocabs))
    return {
        "word_emb": uniform_embedding(keys[0], word_vocab, word_dim),
        "char_emb": uniform_embedding(keys[1], char_vocab, char_emb_dim),
        # Conv1d(char_emb_dim -> char_hidden_dim, kernel=3, pad=1), (k, in, out).
        "char_cnn_w": jax.random.uniform(
            keys[2], (3, char_emb_dim, char_hidden_dim), jnp.float32, -0.1, 0.1),
        "char_cnn_b": jax.random.uniform(
            keys[3], (char_hidden_dim,), jnp.float32, -0.1, 0.1),
        "feat_embs": [
            uniform_embedding(keys[4 + i], v, d)
            for i, (v, d) in enumerate(zip(feat_vocabs, feat_dims))
        ],
    }


def word_rep_forward(params, word_inputs, word_seq_lengths, char_inputs,
                     char_seq_lengths, char_seq_recover, feature_inputs):
    # word_inputs: (B, S) int32; char_inputs: (B*S, L) int32
    B, S = word_inputs.shape
    del word_seq_lengths, char_seq_lengths  # unused by the CharCNN path (as in torch)

    # glue: embedding gathers done in plain JAX
    word_embs = jnp.take(params["word_emb"], word_inputs, axis=0)       # (B,S,Dw)
    word_list = [word_embs]
    for femb, fin in zip(params["feat_embs"], feature_inputs):
        word_list.append(jnp.take(femb, fin, axis=0))                   # (B,S,Df)

    # char path: apply char_seq_recover to the cheap int32 ids up front so the
    # kernel output is already in sentence order (no f32 gather afterwards).
    char_ids = jnp.take(char_inputs, char_seq_recover, axis=0)          # (B*S, L)
    char_feat = char_cnn_features(char_ids, params["char_emb"],
                                  params["char_cnn_w"], params["char_cnn_b"])
    word_list.append(char_feat.reshape(B, S, -1))

    out = jnp.concatenate(word_list, axis=2)
    # self.drop: nn.Dropout is identity in eval mode
    return out


if __name__ == "__main__":
    # small shapes consistent with the module
    B, S, L = 2, 8, 16
    WORD_VOCAB, WORD_DIM = 50, 32
    CHAR_VOCAB, CHAR_EMB, CHAR_HID = 30, 32, 32
    FEAT_VOCABS, FEAT_DIMS = [10], [8]

    key = jax.random.PRNGKey(0)
    kp, kw, kc, kf, kr = jax.random.split(key, 5)

    params = init_params(
        kp, word_vocab=WORD_VOCAB, word_dim=WORD_DIM,
        char_vocab=CHAR_VOCAB, char_emb_dim=CHAR_EMB, char_hidden_dim=CHAR_HID,
        feat_vocabs=FEAT_VOCABS, feat_dims=FEAT_DIMS)

    word_inputs = jax.random.randint(kw, (B, S), 0, WORD_VOCAB, jnp.int32)
    word_seq_lengths = jnp.full((B,), S, jnp.int32)
    char_inputs = jax.random.randint(kc, (B * S, L), 0, CHAR_VOCAB, jnp.int32)
    char_seq_lengths = jnp.full((B * S,), L, jnp.int32)
    char_seq_recover = jax.random.permutation(kr, B * S).astype(jnp.int32)
    feature_inputs = [jax.random.randint(kf, (B, S), 0, FEAT_VOCABS[0], jnp.int32)]

    out = word_rep_forward(params, word_inputs, word_seq_lengths, char_inputs,
                           char_seq_lengths, char_seq_recover, feature_inputs)
    out = jax.block_until_ready(out)
    assert out.shape == (B, S, WORD_DIM + sum(FEAT_DIMS) + CHAR_HID), out.shape

    # sanity check of the fused char path against a plain-JAX f32 reference
    char_ids = jnp.take(char_inputs, char_seq_recover, axis=0)
    got = jax.block_until_ready(char_cnn_features(
        char_ids, params["char_emb"], params["char_cnn_w"], params["char_cnn_b"]))
    ref = _char_cnn_reference(char_ids, params["char_emb"],
                              params["char_cnn_w"], params["char_cnn_b"])
    assert float(jnp.max(jnp.abs(got - ref))) < 3e-2

    # TODO(synk): ELMo branch (external pretrained Embedder + elmo_projection) has
    # no in-script equivalent; only the CharCNN path is implemented.
    print("KERNEL_OK")
</pallas_src>

<mosaic_0001>
module attributes {stable_mosaic.version = 11 : i64} {
  func.func @charcnn_kernel(%arg0: i32, %arg1: memref<16x8x3xi32, #tpu.memory_space<vmem>>, %arg2: memref<128x128xbf16, #tpu.memory_space<vmem>>, %arg3: memref<1x128xf32, #tpu.memory_space<vmem>>, %arg4: memref<8x128xf32, #tpu.memory_space<vmem>>) attributes {dimension_semantics = [#tpu.dimension_semantics<parallel>], iteration_bounds = array<i64: 2>, scalar_prefetch = 0 : i64, scratch_operands = 0 : i64, tpu.core_type = #tpu.core_type<tc>, window_params = [{transform_indices = @transform_0, window_bounds = array<i64: 16, 8, 3>}, {pipeline_mode = #tpu.pipeline_mode<synchronous>, transform_indices = @transform_1, window_bounds = array<i64: 128, 128>}, {pipeline_mode = #tpu.pipeline_mode<synchronous>, transform_indices = @transform_2, window_bounds = array<i64: 1, 128>}, {transform_indices = @transform_3, window_bounds = array<i64: 8, 128>}]} {
    %c0 = arith.constant 0 : index
    %c0_0 = arith.constant 0 : index
    %c0_1 = arith.constant 0 : index
    %0 = vector.load %arg1[%c0, %c0_0, %c0_1] : memref<16x8x3xi32, #tpu.memory_space<vmem>>, vector<16x8x3xi32>
    %1 = tpu.iota {dimensions = array<i32: 2>} : vector<16x8x128xi32>
    %2 = vector.extract_strided_slice %0 {offsets = [0, 0, 0], sizes = [16, 8, 1], strides = [1, 1, 1]} : vector<16x8x3xi32> to vector<16x8x1xi32>
    %3 = vector.broadcast %2 : vector<16x8x1xi32> to vector<16x8x128xi32>
    %4 = arith.cmpi eq, %3, %1 : vector<16x8x128xi32>
    %5 = vector.extract_strided_slice %0 {offsets = [0, 0, 1], sizes = [16, 8, 1], strides = [1, 1, 1]} : vector<16x8x3xi32> to vector<16x8x1xi32>
    %6 = vector.broadcast %5 : vector<16x8x1xi32> to vector<16x8x128xi32>
    %7 = arith.cmpi eq, %6, %1 : vector<16x8x128xi32>
    %8 = arith.ori %4, %7 : vector<16x8x128xi1>
    %9 = vector.extract_strided_slice %0 {offsets = [0, 0, 2], sizes = [16, 8, 1], strides = [1, 1, 1]} : vector<16x8x3xi32> to vector<16x8x1xi32>
    %10 = vector.broadcast %9 : vector<16x8x1xi32> to vector<16x8x128xi32>
    %11 = arith.cmpi eq, %10, %1 : vector<16x8x128xi32>
    %12 = arith.ori %8, %11 : vector<16x8x128xi1>
    %13 = arith.extui %12 : vector<16x8x128xi1> to vector<16x8x128xi32>
    %14 = arith.sitofp %13 : vector<16x8x128xi32> to vector<16x8x128xf32>
    %15 = arith.truncf %14 : vector<16x8x128xf32> to vector<16x8x128xbf16>
    %16 = vector.shape_cast %15 : vector<16x8x128xbf16> to vector<128x128xbf16>
    %c0_2 = arith.constant 0 : index
    %c0_3 = arith.constant 0 : index
    %17 = vector.load %arg2[%c0_2, %c0_3] : memref<128x128xbf16, #tpu.memory_space<vmem>>, vector<128x128xbf16>
    %cst = arith.constant dense<0.000000e+00> : vector<128x128xf32>
    %18 = tpu.matmul %16, %17, %cst {dimension_numbers = #tpu.dot_dimension_numbers<[1], [0], [0], [1], [0, 0, 1, 1], [], []>} : vector<128x128xbf16>, vector<128x128xbf16>, vector<128x128xf32> -> vector<128x128xf32>
    %19 = vector.shape_cast %18 : vector<128x128xf32> to vector<16x8x128xf32>
    %cst_4 = arith.constant dense<0xFF800000> : vector<8x128xf32>
    %20 = vector.multi_reduction <maximumf>, %19, %cst_4 [0] : vector<16x8x128xf32> to vector<8x128xf32>
    %c0_5 = arith.constant 0 : index
    %c0_6 = arith.constant 0 : index
    %21 = vector.load %arg3[%c0_5, %c0_6] : memref<1x128xf32, #tpu.memory_space<vmem>>, vector<1x128xf32>
    %22 = vector.broadcast %21 : vector<1x128xf32> to vector<8x128xf32>
    %23 = arith.addf %20, %22 : vector<8x128xf32>
    %c0_7 = arith.constant 0 : index
    %c0_8 = arith.constant 0 : index
    %24 = vector.load %arg4[%c0_7, %c0_8] : memref<8x128xf32, #tpu.memory_space<vmem>>, vector<8x128xf32>
    tpu.vector_store %arg4[%c0_7, %c0_8], %23 {strides = array<i32>} : memref<8x128xf32, #tpu.memory_space<vmem>>, vector<8x128xf32>,
    return
  }
  func.func @transform_0(%arg0: i32) -> (i32, i32, i32) {
    %c0_i32 = arith.constant 0 : i32
    %c0_i32_0 = arith.constant 0 : i32
    %c0_i32_1 = arith.constant 0 : i32
    return %c0_i32, %arg0, %c0_i32_0 : i32, i32, i32
  }
  func.func @transform_1(%arg0: i32) -> (i32, i32) {
    %c0_i32 = arith.constant 0 : i32
    %c0_i32_0 = arith.constant 0 : i32
    %c0_i32_1 = arith.constant 0 : i32
    return %c0_i32, %c0_i32_0 : i32, i32
  }
  func.func @transform_2(%arg0: i32) -> (i32, i32) {
    %c0_i32 = arith.constant 0 : i32
    %c0_i32_0 = arith.constant 0 : i32
    %c0_i32_1 = arith.constant 0 : i32
    return %c0_i32, %c0_i32_0 : i32, i32
  }
  func.func @transform_3(%arg0: i32) -> (i32, i32) {
    %c0_i32 = arith.constant 0 : i32
    %c0_i32_0 = arith.constant 0 : i32
    return %arg0, %c0_i32 : i32, i32
  }
}

</mosaic_0001>

<bundles_post_ra>
// kernel: tpu_custom_call.1
= control target key start
LH: loop header
LB: loop body
LE: loop exit
PB: predicated region body
PF: predicated region fallthrough
CT: control target
= control target key end

     0   :  { %8 = vsyncpa [#allocation4], 0  ;;  %s1496_s0 = inlined_call_operand.vmem [shape: s32[16,16,3], index: 0, kind: input, shape index: {}]   ;;  %s1497_s1 = inlined_call_operand.vmem [shape: bf16[128,128], index: 1, kind: input, shape index: {}]   ;;  %s1498_s2 = inlined_call_operand.vmem [shape: f32[1,128], index: 2, kind: input, shape index: {}]   ;;  %s1499_s3 = inlined_call_operand.hbm [shape: f32[16,128], index: 3, kind: output, shape index: {}]  }
   0x1   :  { %10 = vsyncpa [#allocation4 + $0x1], 0  ;;  %s1160_s12 = smov 0   ;;  %s1162_s13 = smov 0  }
   0x2   :  { %s1164_s14 = smov 0   ;;  %s1166_s15 = smov 0  }
   0x3 LB: > { %s866_s16 = sadd.s32 4294967295, %s1133_s15   ;;  %s867_s17 = sadd.s32 4294967294, %s1133_s15   ;;  %s1133_s15 = sphi %s1166_s15, %s1523_s15   ;;  %s1129_s14 = sphi %s1164_s14, %s1522_s14   ;;  %s1125_s13 = sphi %s1162_s13, %s1521_s13   ;;  %s1121_s12 = sphi %s1160_s12, %s1520_s12  }
   0x4   : > { %s1183_s18 = sadd.s32 1, %s1133_s15   ;;  %s23_s19 = sadd.s32 1, %s1129_s14 }
   0x5   : > { %s20_s20 = ssub.s32 %s1133_s15, %s1183_s18  ;;  %p30_p0 = scmp.ne.s32.totalorder %s1129_s14, %s1125_s13 }
   0x6   : > { %p21_p1 = scmp.eq.s32.totalorder %s20_s20, 0  ;;  %p31_p2 = scmp.eq.s32.totalorder %s1133_s15, 0 }
   0x7   : > { %p102_p3 = scmp.eq.s32.totalorder %s866_s16, 1  ;;  %p107_p4 = scmp.ne.s32.totalorder %s1125_s13, %s1121_s12 }
   0x8   : > { %s1196_s21 = scalar_select %p21_p1, %s1129_s14, %s23_s19  }
   0x9   : > { %p32_p5 = por %p31_p2, %p30_p0  ;;  %p1198_p6 = por %p102_p3, %p30_p0 }
   0xa   : > { %p108_p7 = scmp.eq.s32.totalorder %s867_s17, 1  ;;  %p1500_p9 = scmp.ge.s32.totalorder %s1133_s15, 2 }
   0xc   : > { %p1202_p8 = por %p108_p7, %p107_p4  ;;  %130 = sbr.rel (%p1500_p9) target bundleno = 29 (0x1d), region = 24 }
  0x11   : > { %133 = sbr.rel (!%p32_p5) target bundleno = 29 (0x1d), region = 28  ;;  %s135_s24 = sand.u32 (%p32_p5), 1, %s1129_s14  }
  0x12   : > { %s871_s25 = sshll.u32 (%p32_p5), %s1133_s15, 3  ;;  %s870_s26 = sshll.u32 (%p32_p5), %s135_s24, 7 }
  0x13   : > { %s1214_s29 = scalar_lea.vmem (%p32_p5), %s1496_s0, %s871_s25  ;;  %s137_s30 = scalar_lea.vmem (%p32_p5), [#allocation2], %s870_s26 }
  0x14   : > { %v198_v0 = vld [vmem:[%s1214_s29] sm:$0xff] (%p32_p5)  ;;  %v200_v1 = vld [vmem:[%s1214_s29 + $0x10] sm:$0xff] (%p32_p5) }
  0x15   : > { %v202_v2 = vld [vmem:[%s1214_s29 + $0x20] sm:$0xff] (%p32_p5)  ;;  %199 = vst [vmem:[%s137_s30] sm:$0xff] (%p32_p5), %v198_v0  ;;  %201 = vst [vmem:[%s137_s30 + $0x8] sm:$0xff] (%p32_p5), %v200_v1  ;;  %v204_v3 = vld [vmem:[%s1214_s29 + $0x30] sm:$0xff] (%p32_p5) }
  0x16   : > { %203 = vst [vmem:[%s137_s30 + $0x10] sm:$0xff] %v202_v2  ;;  %v206_v4 = vld [vmem:[%s1214_s29 + $0x40] sm:$0xff]  ;;  %v208_v5 = vld [vmem:[%s1214_s29 + $0x50] sm:$0xff]  ;;  %205 = vst [vmem:[%s137_s30 + $0x18] sm:$0xff] %v204_v3 }
  0x17   : > { %207 = vst [vmem:[%s137_s30 + $0x20] sm:$0xff] %v206_v4  ;;  %209 = vst [vmem:[%s137_s30 + $0x28] sm:$0xff] %v208_v5  ;;  %v210_v6 = vld [vmem:[%s1214_s29 + $0x60] sm:$0xff]  ;;  %v212_v7 = vld [vmem:[%s1214_s29 + $0x70] sm:$0xff] }
  0x18   : > { %v214_v8 = vld [vmem:[%s1214_s29 + $0x80] sm:$0xff]  ;;  %211 = vst [vmem:[%s137_s30 + $0x30] sm:$0xff] %v210_v6  ;;  %213 = vst [vmem:[%s137_s30 + $0x38] sm:$0xff] %v212_v7  ;;  %v216_v9 = vld [vmem:[%s1214_s29 + $0x90] sm:$0xff] }
  0x19   : > { %215 = vst [vmem:[%s137_s30 + $0x40] sm:$0xff] %v214_v8  ;;  %v218_v10 = vld [vmem:[%s1214_s29 + $0xa0] sm:$0xff]  ;;  %v220_v11 = vld [vmem:[%s1214_s29 + $0xb0] sm:$0xff]  ;;  %217 = vst [vmem:[%s137_s30 + $0x48] sm:$0xff] %v216_v9 }
  0x1a   : > { %219 = vst [vmem:[%s137_s30 + $0x50] sm:$0xff] %v218_v10  ;;  %221 = vst [vmem:[%s137_s30 + $0x58] sm:$0xff] %v220_v11  ;;  %v222_v12 = vld [vmem:[%s1214_s29 + $0xc0] sm:$0xff]  ;;  %v224_v13 = vld [vmem:[%s1214_s29 + $0xd0] sm:$0xff] }
  0x1b   : > { %v226_v14 = vld [vmem:[%s1214_s29 + $0xe0] sm:$0xff]  ;;  %223 = vst [vmem:[%s137_s30 + $0x60] sm:$0xff] %v222_v12  ;;  %225 = vst [vmem:[%s137_s30 + $0x68] sm:$0xff] %v224_v13  ;;  %v228_v15 = vld [vmem:[%s1214_s29 + $0xf0] sm:$0xff] }
  0x1c   : > { %227 = vst [vmem:[%s137_s30 + $0x70] sm:$0xff] %v226_v14  ;;  %229 = vst [vmem:[%s137_s30 + $0x78] sm:$0xff] %v228_v15 }
  0x1d PF: > { %p872_p10 = scmp.ge.s32.totalorder %s1133_s15, 1  ;;  %p234_p11 = scmp.lt.s32.totalorder %s1133_s15, 3 }
  0x1f   : > { %p235_p12 = pnand %p872_p10, %p234_p11 }
  0x20   : > { %s1235_s4 = sand.u32 (!%p235_p12), 1, %s1125_s13   ;;  %s909_s9 = sshll.u32 (!%p235_p12), %s866_s16, 7 }
  0x21   : > { %238 = sbr.rel (%p235_p12) target bundleno = 517 (0x205), region = 66  ;;  %s873_s5 = sshll.u32 (!%p235_p12), %s1235_s4, 7 }
  0x22   : > { %s1240_s6 = scalar_lea.vmem (!%p235_p12), [#allocation2], %s873_s5  ;;  %s800_s20 = scalar_lea.hbm (!%p235_p12), %s1499_s3, %s909_s9 }
  0x23   : > { %s789_s24 = scalar_lea.sflag (!%p235_p12), [#allocation4], %s1235_s4  ;;  %s1139_s26 = smov (!%p235_p12), [#allocation3]  }
  0x24   : > { %s1077_s27 = sshll.u32 (!%p235_p12), %s1139_s26, 4  ;;  %s1078_s27 = int_to_ptr.vmem [resolvable:$false] %s1077_s27 }
  0x25   : > { %s1079_s16 = scalar_lea.vmem (!%p235_p12), %s1078_s27, 256 }
  0x26   : > { %v1135_v16 = vmov 1   ;;  %v1136_v17 = vmov 0   ;;  %v265_v18 = vld [vmem:[%s1240_s6] sm:$0xff]  ;;  %v1244_v19 = vld [vmem:[%s1240_s6 + $0x8] sm:$0xff]  ;;  %v267_v20 = vld [vmem:[%s1240_s6 + $0x10] sm:$0xff]  ;;  %v1137_v25 = vmov 2   ;;  %v281_v60 = vlaneseq }
  0x27   : > { %1044 = vset.pattern.permute.xlu1 %v1135_v16  ;;  %1043 = vset.pattern.permute.xlu0 %v1136_v17  ;;  %v268_v21 = vld [vmem:[%s1240_s6 + $0x18] sm:$0xff]  ;;  %v1252_v22 = vld [vmem:[%s1240_s6 + $0x40] sm:$0xff]  ;;  %v1257_v23 = vld [vmem:[%s1240_s6 + $0x28] sm:$0xff] }
  0x28   : > { %348 = vperm.xlu1 %1044, %v265_v18   ;;  %284 = vperm.xlu0 %1043, %v265_v18   ;;  %v1261_v24 = vld [vmem:[%s1240_s6 + $0x30] sm:$0xff]  ;;  %v1065_v26 = vld [vmem:[%s1497_s1 + $0x38] sm:$0xff]   ;;  %v1269_v27 = vld [vmem:[%s1240_s6 + $0x60] sm:$0xff]  ;;  %v1333_v63 = vand.u32 127, %v281_v60 }
  0x29   : > { %952 = vmatprep.subr.bf16.mxu0 %v1065_v26  ;;  %984 = vmatprep.subr.bf16.mxu1 %v1065_v26  ;;  %v1066_v28 = vld [vmem:[%s1497_s1 + $0x30] sm:$0xff]   ;;  %v1067_v29 = vld [vmem:[%s1497_s1 + $0x28] sm:$0xff]   ;;  %v1068_v31 = vld [vmem:[%s1497_s1 + $0x20] sm:$0xff]  }
  0x2a   : > { %953 = vmatpush3.bf16.msra.mxu0 %v1065_v26  ;;  %992 = vmatpush3.bf16.msra.mxu1 %v1065_v26  ;;  %v274_v30 = vld [vmem:[%s1240_s6 + $0x48] sm:$0xff]  ;;  %v275_v32 = vld [vmem:[%s1240_s6 + $0x50] sm:$0xff]  ;;  %v1069_v33 = vld [vmem:[%s1497_s1 + $0x18] sm:$0xff]  }
  0x2b   : > { %954 = vmatprep.subr.bf16.mxu0 %v1066_v28  ;;  %985 = vmatprep.subr.bf16.mxu1 %v1066_v28  ;;  %v1070_v34 = vld [vmem:[%s1497_s1 + $0x10] sm:$0xff]   ;;  %v278_v35 = vld [vmem:[%s1240_s6 + $0x68] sm:$0xff]  ;;  %v276_v36 = vld [vmem:[%s1240_s6 + $0x58] sm:$0xff] }
  0x2c   : > { %351 = vperm.xlu1 %1044, %v1244_v19   ;;  %287 = vperm.xlu0 %1043, %v1244_v19   ;;  %v1071_v37 = vld [vmem:[%s1497_s1 + $0x8] sm:$0xff]   ;;  %v279_v38 = vld [vmem:[%s1240_s6 + $0x70] sm:$0xff]  ;;  %v1072_v39 = vld [vmem:[%s1497_s1] sm:$0xff]  }
  0x2d   : > { %v269_v40 = vld [vmem:[%s1240_s6 + $0x20] sm:$0xff]  ;;  %v280_v41 = vld [vmem:[%s1240_s6 + $0x78] sm:$0xff] }
  0x2e   : > { %955 = vmatpush3.bf16.msra.mxu0 %v1066_v28  ;;  %993 = vmatpush3.bf16.msra.mxu1 %v1066_v28  ;;  %v272_v42 = vld [vmem:[%s1240_s6 + $0x38] sm:$0xff]  ;;  %s874_s6 = sshll.u32 %s1235_s4, 3 }
  0x2f   : > { %956 = vmatprep.subr.bf16.mxu0 %v1067_v29  ;;  %986 = vmatprep.subr.bf16.mxu1 %v1067_v29  ;;  %s263_s10 = scalar_lea.vmem [#allocation3], %s874_s6 }
  0x30   : > { %1045 = vset.pattern.permute.xlu1 %v1136_v17  ;;  %290 = vperm.xlu0 %1043, %v267_v20   ;;  %s802_s11 = sshll.u32 %s263_s10, 4  ;;  %s803_s11 = int_to_ptr.vmem [resolvable:$true] %s802_s11 }
  0x31   : > { %293 = vperm.xlu1 %1045, %v268_v21   ;;  %s1073_s25 = scalar_lea.vmem %s803_s11, 128  ;;  %p1080_p2 = scmp.lt.s32.totalorder %s803_s11, %s1078_s27 }
  0x32   : > { %957 = vmatpush3.bf16.msra.mxu0 %v1067_v29  ;;  %994 = vmatpush3.bf16.msra.mxu1 %v1067_v29  ;;  %p1074_p13 = scmp.ne.s32.totalorder %s803_s11, %s1073_s25  ;;  %p1081_p3 = scmp.lt.s32.totalorder %s1079_s16, %s1073_s25 }
  0x33   : > { %958 = vmatprep.subr.bf16.mxu0 %v1068_v31  ;;  %987 = vmatprep.subr.bf16.mxu1 %v1068_v31 }
  0x34   : > { %308 = vperm.xlu0 %1043, %v1252_v22   ;;  %p1075_p0 = pnand %p1074_p13, %p1198_p6  ;;  %p1082_p4 = por %p1081_p3, %p1080_p2 }
  0x35   : > { %1046 = vset.pattern.permute.xlu1 %v1135_v16 }
  0x36   : > { %357 = vperm.xlu1 %1046, %v268_v21   ;;  %959 = vmatpush3.bf16.msra.mxu0 %v1068_v31  ;;  %p1076_p1 = pneg %p1075_p0 }
  0x37   : > { %995 = vmatpush3.bf16.msra.mxu1 %v1068_v31  ;;  %960 = vmatprep.subr.bf16.mxu0 %v1069_v33 }
  0x38   : > { %299 = vperm.xlu0 %1043, %v1257_v23   ;;  %988 = vmatprep.subr.bf16.mxu1 %v1069_v33  ;;  %p1083_p5 = pnand %p1082_p4, %p1076_p1 }
  0x3a   : > { %1047 = vset.pattern.permute.xlu1 %v1137_v25  ;;  %961 = vmatpush3.bf16.msra.mxu0 %v1069_v33 }
  0x3b   : > { %428 = vperm.xlu1 %1047, %v265_v18   ;;  %996 = vmatpush3.bf16.msra.mxu1 %v1069_v33 }
  0x3c   : > { %302 = vperm.xlu0 %1043, %v1261_v24   ;;  %962 = vmatprep.subr.bf16.mxu0 %v1070_v34 }
  0x3d   : > { %989 = vmatprep.subr.bf16.mxu1 %v1070_v34 }
  0x3e   : > { %963 = vmatpush3.bf16.msra.mxu0 %v1070_v34 }
  0x3f   : > { %434 = vperm.xlu1 %1047, %v267_v20   ;;  %997 = vmatpush3.bf16.msra.mxu1 %v1070_v34 }
  0x40   : > { %320 = vperm.xlu0 %1043, %v1269_v27   ;;  %964 = vmatprep.subr.bf16.mxu0 %v1071_v37 }
  0x41   : > { %990 = vmatprep.subr.bf16.mxu1 %v1071_v37 }
  0x42   : > { %965 = vmatpush3.bf16.msra.mxu0 %v1071_v37 }
  0x43   : > { %437 = vperm.xlu1 %1047, %v268_v21   ;;  %998 = vmatpush3.bf16.msra.mxu1 %v1071_v37 }
  0x44   : > { %1058 = vset.pattern.permute.xlu0 %v1135_v16  ;;  %966 = vmatprep.subr.bf16.mxu0 %v1072_v39 }
  0x45   : > { %354 = vperm.xlu0 %1058, %v267_v20   ;;  %991 = vmatprep.subr.bf16.mxu1 %v1072_v39 }
  0x46   : > { %967 = vmatpush3.bf16.msra.mxu0 %v1072_v39 }
  0x47   : > { %1048 = vset.pattern.permute.xlu1 %v1136_v17  ;;  %999 = vmatpush3.bf16.msra.mxu1 %v1072_v39 }
  0x48   : > { %311 = vperm.xlu1 %1048, %v274_v30  }
  0x49   : > { %375 = vperm.xlu0 %1058, %v274_v30  }
  0x4c   : > { %1049 = vset.pattern.permute.xlu1 %v1135_v16 }
  0x4d   : > { %372 = vperm.xlu1 %1049, %v1252_v22   ;;  %378 = vperm.xlu0 %1058, %v275_v32  }
  0x51   : > { %1050 = vset.pattern.permute.xlu1 %v1136_v17  ;;  %366 = vperm.xlu0 %1058, %v1261_v24  }
  0x52   : > { %314 = vperm.xlu1 %1050, %v275_v32  }
  0x55   : > { %387 = vperm.xlu0 %1058, %v278_v35  }
  0x56   : > { %317 = vperm.xlu1 %1050, %v276_v36  }
  0x59   : > { %390 = vperm.xlu0 %1058, %v279_v38  }
  0x5a   : > { %1051 = vset.pattern.permute.xlu1 %v1135_v16 }
  0x5b   : > { %381 = vperm.xlu1 %1051, %v276_v36  }
  0x5d   : > { %1062 = vset.pattern.permute.xlu0 %v1137_v25 }
  0x5e   : > { %431 = vperm.xlu0 %1062, %v1244_v19  }
  0x5f   : > { %1052 = vset.pattern.permute.xlu1 %v1137_v25 }
  0x60   : > { %455 = vperm.xlu1 %1052, %v274_v30  }
  0x62   : > { %452 = vperm.xlu0 %1062, %v1252_v22  }
  0x64   : > { %458 = vperm.xlu1 %1052, %v275_v32  }
  0x66   : > { %461 = vperm.xlu0 %1062, %v276_v36  }
  0x68   : > { %1053 = vset.pattern.permute.xlu1 %v1136_v17 }
  0x69   : > { %296 = vperm.xlu1 %1053, %v269_v40  }
  0x6a   : > { %443 = vperm.xlu0 %1062, %v1257_v23  }
  0x6d   : > { %1054 = vset.pattern.permute.xlu1 %v1135_v16 }
  0x6e   : > { %360 = vperm.xlu1 %1054, %v269_v40   ;;  %464 = vperm.xlu0 %1062, %v1269_v27  }
  0x72   : > { %363 = vperm.xlu1 %1054, %v1257_v23   ;;  %473 = vperm.xlu0 %1062, %v280_v41  }
  0x76   : > { %1055 = vset.pattern.permute.xlu1 %v1136_v17 }
  0x77   : > { %305 = vperm.xlu1 %1055, %v272_v42  }
  0x7b   : > { %1056 = vset.pattern.permute.xlu1 %v1135_v16 }
  0x7c   : > { %369 = vperm.xlu1 %1056, %v272_v42  }
  0x80   : > { %1057 = vset.pattern.permute.xlu1 %v1137_v25 }
  0x81   : > { %440 = vperm.xlu1 %1057, %v269_v40  }
  0x85   : > { %446 = vperm.xlu1 %1057, %v1261_v24  }
  0x89   : > { %449 = vperm.xlu1 %1057, %v272_v42  }
  0x8d   : > { %1059 = vset.pattern.permute.xlu1 %v1136_v17 }
  0x8e   : > { %323 = vperm.xlu1 %1059, %v278_v35  }
  0x92   : > { %1060 = vset.pattern.permute.xlu1 %v1135_v16 }
  0x93   : > { %384 = vperm.xlu1 %1060, %v1269_v27  }
  0x97   : > { %1061 = vset.pattern.permute.xlu1 %v1136_v17 }
  0x98   : > { %326 = vperm.xlu1 %1061, %v279_v38  }
  0x9c   : > { %329 = vperm.xlu1 %1061, %v280_v41  }
  0xa0   : > { %1063 = vset.pattern.permute.xlu1 %v1135_v16  ;;  %v1138_v16 = vmov 1.0|1.0  }
  0xa1   : > { %393 = vperm.xlu1 %1063, %v280_v41  }
  0xa3   : > { %v349_v43 = vpop.permute.xlu1 %348  ;;  %v285_v44 = vpop.permute.xlu0 %284 }
  0xa4   : > { %vm395_vm0 = vcmp.eq.s32.totalorder %v349_v43, %v1333_v63  ;;  %vm331_vm1 = vcmp.eq.s32.totalorder %v285_v44, %v1333_v63 }
  0xa5   : > { %1064 = vset.pattern.permute.xlu1 %v1137_v25  ;;  %vm1345_vm6 = vmor %vm331_vm1, %vm395_vm0 }
  0xa6   : > { %467 = vperm.xlu1 %1064, %v278_v35  }
  0xa7   : > { %v352_v45 = vpop.permute.xlu1 %351  ;;  %v288_v46 = vpop.permute.xlu0 %287 }
  0xa8   : > { %vm396_vm4 = vcmp.eq.s32.totalorder %v352_v45, %v1333_v63  ;;  %vm332_vm5 = vcmp.eq.s32.totalorder %v288_v46, %v1333_v63 }
  0xa9   : > { %vm1350_vm9 = vmor %vm332_vm5, %vm396_vm4 }
  0xaa   : > { %470 = vperm.xlu1 %1064, %v279_v38  }
  0xab   : > { %v291_v47 = vpop.permute.xlu0 %290 }
  0xac   : > { %v294_v48 = vpop.permute.xlu1 %293  ;;  %vm333_vm2 = vcmp.eq.s32.totalorder %v291_v47, %v1333_v63 }
  0xad   : > { %vm334_vm10 = vcmp.eq.s32.totalorder %v294_v48, %v1333_v63 }
  0xaf   : > { %v309_v49 = vpop.permute.xlu0 %308 }
  0xb1   : > { %v358_v50 = vpop.permute.xlu1 %357 }
  0xb2   : > { %vm398_vm7 = vcmp.eq.s32.totalorder %v358_v50, %v1333_v63 }
  0xb3   : > { %v1327_v51 = vpop.permute.xlu0 %299  ;;  %vm414_vm12 = vmor %vm334_vm10, %vm398_vm7 }
  0xb6   : > { %v429_v52 = vpop.permute.xlu1 %428 }
  0xb7   : > { %v1329_v53 = vpop.permute.xlu0 %302  ;;  %vm475_vm11 = vcmp.eq.s32.totalorder %v429_v52, %v1333_v63 }
  0xba   : > { %v435_v54 = vpop.permute.xlu1 %434 }
  0xbb   : > { %v1331_v55 = vpop.permute.xlu0 %320  ;;  %vm477_vm13 = vcmp.eq.s32.totalorder %v435_v54, %v1333_v63 }
  0xbe   : > { %v438_v56 = vpop.permute.xlu1 %437 }
  0xbf   : > { %vm478_vm14 = vcmp.eq.s32.totalorder %v438_v56, %v1333_v63 }
  0xc0   : > { %v355_v57 = vpop.permute.xlu0 %354  ;;  %vm1373_vm4 = vmor %vm414_vm12, %vm478_vm14 }
  0xc1   : > { %vm397_vm3 = vcmp.eq.s32.totalorder %v355_v57, %v1333_v63 }
  0xc2   : > { %vm413_vm8 = vmor %vm333_vm2, %vm397_vm3  ;;  %vm339_vm3 = vcmp.eq.s32.totalorder %v309_v49, %v1333_v63 }
  0xc3   : > { %v312_v58 = vpop.permute.xlu1 %311  ;;  %vm1360_vm15 = vmor %vm413_vm8, %vm477_vm13 }
  0xc4   : > { %v376_v59 = vpop.permute.xlu0 %375  ;;  %vm340_vm0 = vcmp.eq.s32.totalorder %v312_v58, %v1333_v63  ;;  %vm1368_vm2 = vmor %vm1345_vm6, %vm475_vm11 }
  0xc5   : > { %vm404_vm1 = vcmp.eq.s32.totalorder %v376_v59, %v1333_v63  ;;  %vm922_vm7 = vmpackc.low %vm1373_vm4, %vm1360_vm15 }
  0xc6   : > { %vm1382_vm8 = vmor %vm340_vm0, %vm404_vm1 }
  0xc8   : > { %v373_v61 = vpop.permute.xlu1 %372  ;;  %v379_v62 = vpop.permute.xlu0 %378 }
  0xc9   : > { %vm403_vm5 = vcmp.eq.s32.totalorder %v373_v61, %v1333_v63  ;;  %vm405_vm10 = vcmp.eq.s32.totalorder %v379_v62, %v1333_v63 }
  0xca   : > { %vm1386_vm6 = vmor %vm339_vm3, %vm403_vm5 }
  0xcc   : > { %v1335_v0 = vpop.permute.xlu0 %366 }
  0xcd   : > { %v315_v1 = vpop.permute.xlu1 %314 }
  0xce   : > { %vm341_vm11 = vcmp.eq.s32.totalorder %v315_v1, %v1333_v63 }
  0xcf   : > { %vm1398_vm1 = vmor %vm341_vm11, %vm405_vm10 }
  0xd0   : > { %v1343_v2 = vpop.permute.xlu0 %387 }
  0xd1   : > { %v318_v4 = vpop.permute.xlu1 %317 }
  0xd2   : > { %vm342_vm10 = vcmp.eq.s32.totalorder %v318_v4, %v1333_v63  ;;  %v907_v4 = vld [vmem:[%s1498_s2] ss:$0 sm:$0xff] }
  0xd4   : > { %v1358_v6 = vpop.permute.xlu0 %390 }
  0xd6   : > { %v382_v8 = vpop.permute.xlu1 %381 }
  0xd7   : > { %vm406_vm3 = vcmp.eq.s32.totalorder %v382_v8, %v1333_v63 }
  0xd9   : > { %v432_v12 = vpop.permute.xlu0 %431 }
  0xda   : > { %vm476_vm12 = vcmp.eq.s32.totalorder %v432_v12, %v1333_v63 }
  0xdb   : > { %v456_v14 = vpop.permute.xlu1 %455  ;;  %vm492_vm13 = vmor %vm1350_vm9, %vm476_vm12 }
  0xdc   : > { %vm484_vm14 = vcmp.eq.s32.totalorder %v456_v14, %v1333_v63  ;;  %vm920_vm0 = vmpackc.low %vm492_vm13, %vm1368_vm2 }
  0xdd   : > { %968 = vmatprep.mubr.msk.bf16.mxu0 %vm920_vm0, %v1138_v16  ;;  %v453_v17 = vpop.permute.xlu0 %452  ;;  %vm500_vm9 = vmor %vm1382_vm8, %vm484_vm14  ;;  %vm336_vm14 = vcmp.eq.s32.totalorder %v1327_v51, %v1333_v63 }
  0xde   : > { %vm483_vm5 = vcmp.eq.s32.totalorder %v453_v17, %v1333_v63  ;;  %969 = vmatmul.mubr.msk.bf16.vlgmr.msra.gmra.mxu0 %vm922_vm7, %v1138_v16  ;;  %vm422_vm13 = vmor %vm342_vm10, %vm406_vm3 }
  0xdf   : > { %v459_v18 = vpop.permute.xlu1 %458  ;;  %vm499_vm2 = vmor %vm1386_vm6, %vm483_vm5 }
  0xe0   : > { %vm485_vm11 = vcmp.eq.s32.totalorder %v459_v18, %v1333_v63  ;;  %vm928_vm12 = vmpackc.low %vm500_vm9, %vm499_vm2 }
  0xe1   : > { %976 = vmatprep.mubr.msk.bf16.mxu1 %vm928_vm12, %v1138_v16  ;;  %v462_v19 = vpop.permute.xlu0 %461  ;;  %vm501_vm15 = vmor %vm1398_vm1, %vm485_vm11 }
  0xe2   : > { %vm486_vm4 = vcmp.eq.s32.totalorder %v462_v19, %v1333_v63 }
  0xe3   : > { %vm502_vm7 = vmor %vm422_vm13, %vm486_vm4  ;;  %vm337_vm13 = vcmp.eq.s32.totalorder %v1329_v53, %v1333_v63 }
  0xe4   : > { %vm930_vm8 = vmpackc.low %vm502_vm7, %vm501_vm15  ;;  %v297_v20 = vpop.permute.xlu1 %296  ;;  %vm401_vm15 = vcmp.eq.s32.totalorder %v1335_v0, %v1333_v63 }
  0xe5   : > { %977 = vmatmul.mubr.msk.bf16.vlgmr.msra.gmra.mxu1 %vm930_vm8, %v1138_v16  ;;  %v444_v24 = vpop.permute.xlu0 %443  ;;  %vm335_vm5 = vcmp.eq.s32.totalorder %v297_v20, %v1333_v63  ;;  %vm417_vm8 = vmor %vm337_vm13, %vm401_vm15  ;;  %vm408_vm13 = vcmp.eq.s32.totalorder %v1343_v2, %v1333_v63 }
  0xe6   : > { %vm480_vm3 = vcmp.eq.s32.totalorder %v444_v24, %v1333_v63 }
  0xe9   : > { %v361_v21 = vpop.permute.xlu1 %360  ;;  %v465_v33 = vpop.permute.xlu0 %464 }
  0xea   : > { %vm399_vm0 = vcmp.eq.s32.totalorder %v361_v21, %v1333_v63 }
  0xeb   : > { %vm415_vm9 = vmor %vm335_vm5, %vm399_vm0 }
  0xed   : > { %v364_v22 = vpop.permute.xlu1 %363  ;;  %v474_v36 = vpop.permute.xlu0 %473 }
  0xee   : > { %vm400_vm6 = vcmp.eq.s32.totalorder %v364_v22, %v1333_v63 }
  0xef   : > { %vm416_vm1 = vmor %vm336_vm14, %vm400_vm6 }
  0xf0   : > { %vm496_vm2 = vmor %vm416_vm1, %vm480_vm3 }
  0xf2   : > { %v306_v23 = vpop.permute.xlu1 %305 }
  0xf3   : > { %vm338_vm6 = vcmp.eq.s32.totalorder %v306_v23, %v1333_v63 }
  0xf7   : > { %v370_v25 = vpop.permute.xlu1 %369 }
  0xf8   : > { %vm402_vm4 = vcmp.eq.s32.totalorder %v370_v25, %v1333_v63 }
  0xf9   : > { %vm418_vm14 = vmor %vm338_vm6, %vm402_vm4 }
  0xfc   : > { %v441_v26 = vpop.permute.xlu1 %440 }
  0xfd   : > { %vm479_vm10 = vcmp.eq.s32.totalorder %v441_v26, %v1333_v63 }
  0xfe   : > { %vm495_vm11 = vmor %vm415_vm9, %vm479_vm10 }
  0xff   : > { %vm924_vm12 = vmpackc.low %vm496_vm2, %vm495_vm11  ;;  %vm343_vm2 = vcmp.eq.s32.totalorder %v1331_v55, %v1333_v63  ;;  %vm487_vm11 = vcmp.eq.s32.totalorder %v465_v33, %v1333_v63 }
 0x100   : > { %v447_v27 = vpop.permute.xlu1 %446  ;;  %972 = vmatprep.mubr.msk.bf16.mxu0 %vm924_vm12, %v1138_v16 }
 0x101   : > { %vm481_vm7 = vcmp.eq.s32.totalorder %v447_v27, %v1333_v63 }
 0x102   : > { %vm497_vm0 = vmor %vm417_vm8, %vm481_vm7 }
 0x104   : > { %v450_v28 = vpop.permute.xlu1 %449 }
 0x105   : > { %vm482_vm1 = vcmp.eq.s32.totalorder %v450_v28, %v1333_v63 }
 0x106   : > { %vm498_vm3 = vmor %vm418_vm14, %vm482_vm1 }
 0x107   : > { %vm926_vm5 = vmpackc.low %vm498_vm3, %vm497_vm0  ;;  %vm409_vm3 = vcmp.eq.s32.totalorder %v1358_v6, %v1333_v63 }
 0x108   : > { %973 = vmatmul.mubr.msk.bf16.gmra.mxu0 %vm926_vm5, %v1138_v16 }
 0x109   : > { %v324_v29 = vpop.permute.xlu1 %323 }
 0x10a   : > { %vm344_vm10 = vcmp.eq.s32.totalorder %v324_v29, %v1333_v63 }
 0x10b   : > { %vm424_vm4 = vmor %vm344_vm10, %vm408_vm13 }
 0x10e   : > { %v385_v30 = vpop.permute.xlu1 %384 }
 0x10f   : > { %vm407_vm9 = vcmp.eq.s32.totalorder %v385_v30, %v1333_v63 }
 0x110   : > { %vm423_vm12 = vmor %vm343_vm2, %vm407_vm9  ;;  %vm490_vm9 = vcmp.eq.s32.totalorder %v474_v36, %v1333_v63 }
 0x111   : > { %vm503_vm7 = vmor %vm423_vm12, %vm487_vm11 }
 0x113   : > { %v327_v31 = vpop.permute.xlu1 %326 }
 0x114   : > { %vm345_vm6 = vcmp.eq.s32.totalorder %v327_v31, %v1333_v63 }
 0x115   : > { %vm425_vm2 = vmor %vm345_vm6, %vm409_vm3 }
 0x117   : > { %v330_v32 = vpop.permute.xlu1 %329 }
 0x118   : > { %vm346_vm8 = vcmp.eq.s32.totalorder %v330_v32, %v1333_v63 }
 0x11c   : > { %v394_v34 = vpop.permute.xlu1 %393 }
 0x11d   : > { %vm410_vm15 = vcmp.eq.s32.totalorder %v394_v34, %v1333_v63 }
 0x11e   : > { %vm426_vm14 = vmor %vm346_vm8, %vm410_vm15 }
 0x11f   : > { %vm506_vm10 = vmor %vm426_vm14, %vm490_vm9 }
 0x121   : > { %v468_v35 = vpop.permute.xlu1 %467 }
 0x122   : > { %vm488_vm0 = vcmp.eq.s32.totalorder %v468_v35, %v1333_v63 }
 0x123   : > { %vm504_vm1 = vmor %vm424_vm4, %vm488_vm0 }
 0x124   : > { %vm932_vm5 = vmpackc.low %vm504_vm1, %vm503_vm7 }
 0x125   : > { %v471_v37 = vpop.permute.xlu1 %470  ;;  %980 = vmatprep.mubr.msk.bf16.mxu1 %vm932_vm5, %v1138_v16 }
 0x126   : > { %vm489_vm11 = vcmp.eq.s32.totalorder %v471_v37, %v1333_v63 }
 0x127   : > { %vm505_vm12 = vmor %vm425_vm2, %vm489_vm11 }
 0x128   : > { %vm934_vm13 = vmpackc.low %vm506_vm10, %vm505_vm12 }
 0x129   : > { %981 = vmatmul.mubr.msk.bf16.gmra.mxu1 %vm934_vm13, %v1138_v16 }
 0x19e   : > { %v970_v38 = vpop.f32.mrf.mxu0 }
 0x1a0   : > { %v701_v39 = vpop.f32.mrf.mxu0 }
 0x1a2   : > { %v971_v40 = vpop.f32.mrf.mxu0 }
 0x1a4   : > { %v704_v41 = vpop.f32.mrf.mxu0 }
 0x1a5   : > { %v978_v42 = vpop.f32.mrf.mxu1 }
 0x1a7   : > { %v733_v44 = vpop.f32.mrf.mxu1 }
 0x1a9   : > { %v979_v46 = vpop.f32.mrf.mxu1 }
 0x1ab   : > { %v736_v48 = vpop.f32.mrf.mxu1 }
 0x1c8   : > { %v974_v43 = vpop.f32.mrf.mxu0 }
 0x1c9   : > { %v766_v52 = vmax.f32 %v970_v38, %v974_v43 }
 0x1ca   : > { %v717_v45 = vpop.f32.mrf.mxu0 }
 0x1cb   : > { %v764_v53 = vmax.f32 %v701_v39, %v717_v45  ;;  %v770_v58 = vmax.f32 %v766_v52, %v978_v42 }
 0x1cc   : > { %v975_v47 = vpop.f32.mrf.mxu0 }
 0x1cd   : > { %v767_v50 = vmax.f32 %v971_v40, %v975_v47  ;;  %v768_v59 = vmax.f32 %v764_v53, %v733_v44 }
 0x1ce   : > { %v720_v49 = vpop.f32.mrf.mxu0 }
 0x1cf   : > { %v765_v54 = vmax.f32 %v704_v41, %v720_v49  ;;  %v771_v56 = vmax.f32 %v767_v50, %v979_v46 }
 0x1d1   : > { %v769_v61 = vmax.f32 %v765_v54, %v736_v48 }
 0x1e9   : > { %v982_v51 = vpop.f32.mrf.mxu1 }
 0x1ea   : > { %v774_v63 = vmax.f32 %v770_v58, %v982_v51 }
 0x1eb   : > { %v749_v55 = vpop.f32.mrf.mxu1 }
 0x1ec   : > { %v772_v0 = vmax.f32 %v768_v59, %v749_v55 }
 0x1ed   : > { %v983_v57 = vpop.f32.mrf.mxu1 }
 0x1ee   : > { %v775_v60 = vmax.f32 %v771_v56, %v983_v57 }
 0x1ef   : > { %v752_v62 = vpop.f32.mrf.mxu1 }
 0x1f0   : > { %v773_v1 = vmax.f32 %v769_v61, %v752_v62  ;;  %v777_v2 = vmax.f32 %v774_v63, %v775_v60 }
 0x1f2   : > { %v776_v3 = vmax.f32 %v772_v0, %v773_v1 }
 0x1f4   : > { %v778_v5 = vmax.f32 %v776_v3, %v777_v2 }
 0x1f6   : > { %v786_v6 = vadd.f32 %v907_v4, %v778_v5 }
 0x1f8   : > { %787 = vst [vmem:[%s263_s10] sm:$0xff] %v786_v6 }
 0x1f9   : > { %1086 = shalt.err (!%p1083_p5)
}
 0x1fa   : > { %s1087_s28 = scalar_lea.hbm %s800_s20, 128  ;;  %s1091_s30 = scalar_lea.hbm %s1499_s3, 256 }
 0x1fb   : > { %p1088_p7 = scmp.ne.s32.totalorder %s800_s20, %s1087_s28  ;;  %p1092_p12 = scmp.lt.s32.totalorder %s800_s20, %s1499_s3 }
 0x1fc   : > { %p1093_p13 = scmp.lt.s32.totalorder %s1091_s30, %s1087_s28 }
 0x1fd   : > { %p1089_p10 = pnand %p1088_p7, %p1198_p6 }
 0x1fe   : > { %p1094_p0 = por %p1093_p13, %p1092_p12 }
 0x1ff   : > { %p1090_p11 = pneg %p1089_p10 }
 0x201   : > { %p1095_p9 = pnand %p1094_p0, %p1090_p11 }
 0x203   : > { %1098 = shalt.err (!%p1095_p9)
}
 0x204   : > { %1000 = dma.vmem_to_hbm [thread:$0]  (%p1198_p6), %s803_s11, 128, %s800_s20, %s789_s24  }
 0x205 PF: > { %s814_s7 = sand.u32 1, %s1121_s12   ;;  %p1519_p1 = scmp.ge.s32.totalorder %s1133_s15, 2 }
 0x206   : > { %s815_s8 = scalar_lea.sflag [#allocation4], %s814_s7 }
 0x207   : > { %p1003_p2 = pnand %p1519_p1, %p1202_p8 }
 0x209   : > { %p1004_p3 = pneg %p1003_p2 }
 0x20b   : > { %1116 = dma.done.wait (%p1004_p3), %s815_s8, 128  }
 0x20c   : > { %1118 = vsyncadd (%p1004_p3), %s815_s8, 4294967168  ;;  %p13_p9 = scmp.ge.s32.totalorder %s1183_s18, 4   ;;  %s1520_s12 = smov %s1125_s13 }
 0x20d   : > { %s1521_s13 = smov %s1129_s14  ;;  %s1522_s14 = smov %s1196_s21 }
 0x20e   : > { %s1523_s15 = smov %s1183_s18  ;;  %15 = sbr.rel (!%p13_p9) target bundleno = 3 (0x3), region = 110 }
 0x213   :  { %820 = vsyncpa [#allocation4], 1 }
 0x214   :  { %822 = vsyncpa [#allocation4 + $0x1], 1 }

</bundles_post_ra>
